<compile_context>
chip_gen: v7x
topology: tpu7x:2x2x1
jax: 0.10.0
libtpu: 0.0.40
codegen_flags: <defaults>
</compile_context>

<pallas_src>
import functools

import jax
import jax.numpy as jnp
from jax.experimental import pallas as pl
from jax.experimental.pallas import tpu as pltpu

_LANE = 128
_SUBLANE = 8


# ----------------------------- kernels ------------------------------------ #

def _replicate_kernel(patch_ref, out_ref, *, clamp_lo=None, clamp_hi=None):
    # patch_ref: (1, P) lane-dense patch row, resident in VMEM for all steps.
    # out_ref:   (TN, P) output block for this grid step.
    p = patch_ref[...]
    if clamp_lo is not None or clamp_hi is not None:
        p = jnp.clip(p, clamp_lo, clamp_hi)
    out_ref[...] = jnp.broadcast_to(p, out_ref.shape)


def _clamp_kernel(x_ref, o_ref, *, low, high):
    o_ref[...] = jnp.clip(x_ref[...], low, high)


# ----------------------------- wrappers ------------------------------------ #

def _flatten_lane_dense(patch):
    """(C,H,W) -> (1, P) with P a multiple of 128 (zero padded)."""
    flat = int(patch.size)
    p_cols = pl.cdiv(flat, _LANE) * _LANE
    row = patch.reshape(1, flat)
    if p_cols != flat:
        row = jnp.pad(row, ((0, 0), (0, p_cols - flat)))
    return row, flat, p_cols


def patch_wrapper_forward(
    patch: jax.Array,
    N: int,
    *,
    clamp_lo=None,
    clamp_hi=None,
    target_block_bytes: int = 2 << 20,     # ~2 MiB output block per grid step
    min_pallas_out_bytes: int = 1 << 20,   # below this, XLA broadcast wins
    force_pallas: bool = False,
) -> jax.Array:
    """Replicate `patch` (C,H,W) into a batch (N,C,H,W); optionally fuse clamp."""
    C, H, W = patch.shape
    itemsize = patch.dtype.itemsize
    out_bytes = N * C * H * W * itemsize

    if not force_pallas and out_bytes < min_pallas_out_bytes:
        # Tiny problem: pure launch/loop overhead in a kernel; use lazy broadcast.
        p = patch if (clamp_lo is None and clamp_hi is None) else jnp.clip(
            patch, clamp_lo, clamp_hi)
        return jnp.broadcast_to(p[None], (N, C, H, W))

    flat_patch, flat, p_cols = _flatten_lane_dense(patch)

    # Rows of output per grid step: ~target_block_bytes, multiple of 8,
    # but never grossly larger than N itself.
    tn = max(1, target_block_bytes // (p_cols * itemsize))
    tn = max(_SUBLANE, (tn // _SUBLANE) * _SUBLANE)
    tn = min(tn, pl.cdiv(N, _SUBLANE) * _SUBLANE)
    n_pad = pl.cdiv(N, tn) * tn
    grid = (n_pad // tn,)

    # Double-buffered output block + resident patch row (+slack). Safe on
    # v5e's 16 MiB scoped default and v7x's 64 MiB physical VMEM.
    vmem_bytes = 2 * tn * p_cols * itemsize + 2 * p_cols * itemsize + (2 << 20)
    vmem_bytes = int(min(max(vmem_bytes, 4 << 20), 96 << 20))

    kernel = functools.partial(
        _replicate_kernel, clamp_lo=clamp_lo, clamp_hi=clamp_hi)

    out_flat = pl.pallas_call(
        kernel,
        out_shape=jax.ShapeDtypeStruct((n_pad, p_cols), patch.dtype),
        grid_spec=pltpu.PrefetchScalarGridSpec(
            num_scalar_prefetch=0,
            grid=grid,
            # Full-array patch block, grid-independent -> fetched once.
            in_specs=[pl.BlockSpec((1, p_cols), lambda i: (0, 0))],
            # Lane-dense (TN, P) output block per step.
            out_specs=pl.BlockSpec((tn, p_cols), lambda i: (i, 0)),
        ),
        compiler_params=pltpu.CompilerParams(
            dimension_semantics=("parallel",),
            vmem_limit_bytes=vmem_bytes,
        ),
    )(flat_patch)

    return out_flat[:N, :flat].reshape(N, C, H, W)


def patch_wrapper_clamp(patch: jax.Array, low=0.0, high=1.0) -> jax.Array:
    """Functional equivalent of PatchWrapper.clamp (torch clamp_ is in-place;
    here the padded staging buffer is aliased to the output to avoid an extra
    HBM allocation, and a new (C,H,W) array is returned)."""
    C, H, W = patch.shape
    flat_patch, flat, p_cols = _flatten_lane_dense(patch)
    out = pl.pallas_call(
        functools.partial(_clamp_kernel, low=low, high=high),
        out_shape=jax.ShapeDtypeStruct((1, p_cols), patch.dtype),
        grid_spec=pltpu.PrefetchScalarGridSpec(
            num_scalar_prefetch=0,
            grid=(1,),
            in_specs=[pl.BlockSpec((1, p_cols), lambda i: (0, 0))],
            out_specs=pl.BlockSpec((1, p_cols), lambda i: (0, 0)),
        ),
        input_output_aliases={0: 0},
    )(flat_patch)
    return out[0, :flat].reshape(C, H, W)


class PatchWrapper:
    """JAX/Pallas port of the torch PatchWrapper module (forward + clamp)."""

    def __init__(self, patch, single_patch=True):
        self.patch = patch                 # array or dict of arrays
        self.single_patch = single_patch

    def forward(self, N=None, **kw):
        if self.single_patch:
            if isinstance(self.patch, dict):
                # ParameterDict branch: same replicate op per key (plain glue).
                return {k: patch_wrapper_forward(v, N, **kw)
                        for k, v in self.patch.items()}
            return patch_wrapper_forward(self.patch, N, **kw)
        return self.patch

    def clamp(self, low=0.0, high=1.0):
        if isinstance(self.patch, dict):
            self.patch = {k: patch_wrapper_clamp(v, low, high)
                          for k, v in self.patch.items()}
        else:
            self.patch = patch_wrapper_clamp(self.patch, low, high)

    __call__ = forward


# TODO(synk): torch's DDP gradient-sync machinery has no Pallas equivalent;
# only forward/clamp semantics are ported.


if __name__ == "__main__":
    key = jax.random.PRNGKey(0)
    C, H, W = 4, 16, 16
    N = 2
    patch = jax.random.uniform(key, (C, H, W), dtype=jnp.float32)

    # 1) forward(N) through the Pallas kernel (forced, since this example is tiny)
    out = jax.block_until_ready(
        patch_wrapper_forward(patch, N, force_pallas=True))
    assert out.shape == (N, C, H, W)
    ref = jnp.broadcast_to(patch[None], (N, C, H, W))
    assert bool(jnp.all(out == ref))

    # 2) small-size bypass path gives identical results
    out_bypass = jax.block_until_ready(patch_wrapper_forward(patch, N))
    assert bool(jnp.all(out_bypass == ref))

    # 3) standalone clamp (aliased output) matches jnp.clip
    shifted = patch * 3.0 - 1.0
    clamped = jax.block_until_ready(patch_wrapper_clamp(shifted, 0.0, 1.0))
    assert bool(jnp.all(clamped == jnp.clip(shifted, 0.0, 1.0)))

    # 4) fused clamp + replicate inside the forward kernel
    fused = jax.block_until_ready(
        patch_wrapper_forward(shifted, N, clamp_lo=0.0, clamp_hi=1.0,
                              force_pallas=True))
    assert bool(jnp.all(fused == jnp.broadcast_to(
        jnp.clip(shifted, 0.0, 1.0)[None], (N, C, H, W))))

    # 5) module-style wrapper
    pw = PatchWrapper(patch, single_patch=True)
    out_mod = jax.block_until_ready(pw(N, force_pallas=True))
    assert bool(jnp.all(out_mod == ref))

    print("KERNEL_OK")
</pallas_src>

<mosaic_0001>
module attributes {stable_mosaic.version = 11 : i64} {
  func.func @_replicate_kernel(%arg0: i32, %arg1: memref<1x1024xf32, #tpu.memory_space<vmem>>, %arg2: memref<8x1024xf32, #tpu.memory_space<vmem>>) attributes {dimension_semantics = [#tpu.dimension_semantics<parallel>], iteration_bounds = array<i64: 1>, scalar_prefetch = 0 : i64, scratch_operands = 0 : i64, tpu.core_type = #tpu.core_type<tc>, window_params = [{pipeline_mode = #tpu.pipeline_mode<synchronous>, transform_indices = @transform_0, window_bounds = array<i64: 1, 1024>}, {transform_indices = @transform_1, window_bounds = array<i64: 8, 1024>}]} {
    %c0 = arith.constant 0 : index
    %c0_0 = arith.constant 0 : index
    %0 = vector.load %arg1[%c0, %c0_0] : memref<1x1024xf32, #tpu.memory_space<vmem>>, vector<1x1024xf32>
    %1 = vector.shape_cast %0 : vector<1x1024xf32> to vector<1x1024xf32>
    %2 = vector.broadcast %1 : vector<1x1024xf32> to vector<8x1024xf32>
    %c0_1 = arith.constant 0 : index
    %c0_2 = arith.constant 0 : index
    %3 = vector.load %arg2[%c0_1, %c0_2] : memref<8x1024xf32, #tpu.memory_space<vmem>>, vector<8x1024xf32>
    tpu.vector_store %arg2[%c0_1, %c0_2], %2 {strides = array<i32>} : memref<8x1024xf32, #tpu.memory_space<vmem>>, vector<8x1024xf32>,
    return
  }
  func.func @transform_0(%arg0: i32) -> (i32, i32) {
    %c0_i32 = arith.constant 0 : i32
    %c0_i32_0 = arith.constant 0 : i32
    %c0_i32_1 = arith.constant 0 : i32
    return %c0_i32, %c0_i32_0 : i32, i32
  }
  func.func @transform_1(%arg0: i32) -> (i32, i32) {
    %c0_i32 = arith.constant 0 : i32
    %c0_i32_0 = arith.constant 0 : i32
    return %arg0, %c0_i32 : i32, i32
  }
}

</mosaic_0001>

<bundles_post_ra>
// kernel: tpu_custom_call.1
= control target key start
LH: loop header
LB: loop body
LE: loop exit
PB: predicated region body
PF: predicated region fallthrough
CT: control target
= control target key end

     0   :  { %6 = vsyncpa [#allocation3], 0  ;;  %s172_s0 = inlined_call_operand.hbm [shape: f32[1,1024], index: 0, kind: input, shape index: {}]   ;;  %s173_s1 = inlined_call_operand.hbm [shape: f32[8,1024], index: 1, kind: output, shape index: {}]  }
   0x1   :  { %7 = vsyncpa [#allocation4], 0  ;;  %s136_s6 = smov [#allocation2]   ;;  %s88_s10 = scalar_lea.hbm %s172_s0, 128 }
   0x2   :  { %s14_s7 = sshll.u32 %s136_s6, 4  ;;  %p89_p0 = scmp.ne.s32.totalorder %s172_s0, %s88_s10  ;;  %s15_s7 = int_to_ptr.vmem [resolvable:$true] %s14_s7 }
   0x3   :  { %p92_p1 = scmp.lt.u32.totalorder %s88_s10, %s172_s0 }
   0x5   :  { %p94_p2 = pnand %p92_p1, %p89_p0 }
   0x7   :  { %97 = shalt.err (!%p94_p2)
}
   0x8   :  { %s98_s15 = scalar_lea.vmem %s15_s7, 128  ;;  %p103_p4 = scmp.lt.s32.totalorder %s15_s7, %s15_s7 }
   0x9   :  { %p99_p3 = scmp.ne.s32.totalorder %s15_s7, %s98_s15  ;;  %p104_p5 = scmp.lt.s32.totalorder %s98_s15, %s98_s15 }
   0xb   :  { %p105_p6 = por %p104_p5, %p103_p4 }
   0xd   :  { %p106_p7 = pnand %p105_p6, %p99_p3 }
   0xf   :  { %109 = shalt.err (!%p106_p7)
}
  0x10   :  { %17 = dma.hbm_to_vmem [thread:$0]  %s172_s0, 128, %s15_s7, [#allocation3]  }
  0x11   :  { %132 = dma.done.wait [#allocation3], 128  }
  0x12   :  { %133 = vsyncadd [#allocation3], 4294967168  ;;  %v23_v0 = vlaneseq  ;;  %s137_s18 = smov [#allocation5]   ;;  %v21_v10 = vld [vmem:[#allocation2] sm:$0xff] }
  0x13   :  { %s77_s19 = sshll.u32 %s137_s18, 4  ;;  %s78_s19 = int_to_ptr.vmem [resolvable:$true] %s77_s19 }
  0x14   :  { %v24_v1 = vshrl.u32 %v23_v0, 7  ;;  %s110_s0 = scalar_lea.vmem %s78_s19, 1024  ;;  %p115_p9 = scmp.lt.s32.totalorder %s78_s19, %s78_s19 }
  0x15   :  { %p111_p8 = scmp.ne.s32.totalorder %s78_s19, %s110_s0  ;;  %p116_p10 = scmp.lt.s32.totalorder %s110_s0, %s110_s0 }
  0x16   :  { %v25_v2 = vsub.s32 0, %v24_v1  ;;  %v29_v3 = vsub.s32 1, %v24_v1  ;;  %v33_v4 = vsub.s32 2, %v24_v1  ;;  %v37_v5 = vsub.s32 3, %v24_v1 }
  0x17   :  { %v41_v6 = vsub.s32 4, %v24_v1  ;;  %v45_v7 = vsub.s32 5, %v24_v1  ;;  %v49_v8 = vsub.s32 6, %v24_v1  ;;  %v53_v9 = vsub.s32 7, %v24_v1  ;;  %p117_p11 = por %p116_p10, %p115_p9 }
  0x18   :  { %v26_v11 = vrot.slane %v21_v10, %v25_v2  ;;  %v30_v12 = vrot.slane %v21_v10, %v29_v3  ;;  %v34_v13 = vrot.slane %v21_v10, %v33_v4  ;;  %v38_v14 = vrot.slane %v21_v10, %v37_v5 }
  0x19   :  { %v42_v15 = vrot.slane %v21_v10, %v41_v6  ;;  %v46_v16 = vrot.slane %v21_v10, %v45_v7  ;;  %v50_v17 = vrot.slane %v21_v10, %v49_v8  ;;  %v54_v18 = vrot.slane %v21_v10, %v53_v9  ;;  %p118_p12 = pnand %p117_p11, %p111_p8 }
  0x1a   :  { %63 = vst [vmem:[#allocation5] sm:$0xff] %v26_v11  ;;  %64 = vst [vmem:[#allocation5 + $0x8] sm:$0xff] %v30_v12 }
  0x1b   :  { %65 = vst [vmem:[#allocation5 + $0x10] sm:$0xff] %v34_v13  ;;  %66 = vst [vmem:[#allocation5 + $0x18] sm:$0xff] %v38_v14 }
  0x1c   :  { %67 = vst [vmem:[#allocation5 + $0x20] sm:$0xff] %v42_v15  ;;  %68 = vst [vmem:[#allocation5 + $0x28] sm:$0xff] %v46_v16 }
  0x1d   :  { %69 = vst [vmem:[#allocation5 + $0x30] sm:$0xff] %v50_v17  ;;  %70 = vst [vmem:[#allocation5 + $0x38] sm:$0xff] %v54_v18 }
  0x1e   :  { %121 = shalt.err (!%p118_p12)
}
  0x1f   :  { %s122_s22 = scalar_lea.hbm %s173_s1, 1024 }
  0x20   :  { %p123_p13 = scmp.ne.s32.totalorder %s173_s1, %s122_s22  ;;  %p126_p0 = scmp.lt.u32.totalorder %s122_s22, %s173_s1 }
  0x22   :  { %p128_p1 = pnand %p126_p0, %p123_p13 }
  0x24   :  { %131 = shalt.err (!%p128_p1)
}
  0x25   :  { %80 = dma.vmem_to_hbm [thread:$0]  %s78_s19, 1024, %s173_s1, [#allocation4]  }
  0x26   :  { %134 = dma.done.wait [#allocation4], 1024  }
  0x27   :  { %135 = vsyncadd [#allocation4], 4294966272 }
  0x28   :  { %84 = vsyncpa [#allocation3], 1 }
  0x29   :  { %85 = vsyncpa [#allocation4], 1 }

</bundles_post_ra>
